<compile_context>
chip_gen: v6e
topology: v6e:2x2x1
jax: 0.10.0
libtpu: 0.0.40
codegen_flags: <defaults>
</compile_context>

<pallas_src>
import functools

import jax
import jax.numpy as jnp
from jax.experimental import pallas as pl
from jax.experimental.pallas import tpu as pltpu


def _attention_kernel(x_ref, xkv_ref,
                      wq_ref, bq_ref,
                      wkv_ref, bkv_ref,
                      wl_ref, bl_ref,
                      out_ref,
                      q_scr, ctx_scr,
                      *, block_b, s_q, block_k, d_k, feat):
    kk = pl.program_id(1)
    compute_dtype = q_scr.dtype      # == input dtype (bf16 stays bf16 on the MXU)

    @pl.when(kk == 0)
    def _():
        # Query projection once per batch block: one wide MXU matmul with
        # M = block_b*S (the x block is resident across the key axis).
        x = x_ref[...]                                         # (block_b*S, F)
        q = jnp.dot(x, wq_ref[...],
                    preferred_element_type=jnp.float32) + bq_ref[...]
        # Fold 1/sqrt(d_k) into q (much smaller than the scores tensor).
        q = q * (1.0 / (float(d_k) ** 0.5))
        q_scr[...] = q.reshape(block_b, s_q, d_k).astype(compute_dtype)
        ctx_scr[...] = jnp.zeros_like(ctx_scr)

    # Fused K|V projection for this key tile: one MXU matmul, N = 2*d_k.
    xkv = xkv_ref[...].reshape(block_b * block_k, feat)
    kv = jnp.dot(xkv, wkv_ref[...],
                 preferred_element_type=jnp.float32) + bkv_ref[...]
    kv = kv.astype(compute_dtype).reshape(block_b, block_k, 2 * d_k)
    k = kv[..., :d_k]
    v = kv[..., d_k:]

    # scores[b, s, t] = q[b, s, :] . k[b, t, :]  (contraction on last dims, no
    # explicit XLU transpose).  Operands are input-dtype; accumulation is f32.
    scores = jnp.einsum("bqd,bkd->bqk", q_scr[...], k,
                        preferred_element_type=jnp.float32)

    # Softmax over the *query* axis (dim=-2), matching the PyTorch module.
    # Each key column is normalized independently, so per-key-tile softmax is
    # exact and the key axis can be tiled freely.
    m = jnp.max(scores, axis=-2, keepdims=True)
    e = jnp.exp(scores - m)
    denom = jnp.sum(e, axis=-2, keepdims=True)
    # denom >= 1 (max subtraction) -> EUP approx reciprocal + one Newton step.
    r = pl.reciprocal(denom, approx=True)
    r = r * (2.0 - denom * r)
    attn = (e * r).astype(compute_dtype)

    # Accumulate ctx over key tiles in f32 scratch.
    ctx_scr[...] += jnp.einsum("bqk,bkd->bqd", attn, v,
                               preferred_element_type=jnp.float32)

    @pl.when(kk == pl.num_programs(1) - 1)
    def _():
        ctx = ctx_scr[...].astype(compute_dtype).reshape(block_b * s_q, d_k)
        out = jnp.dot(ctx, wl_ref[...],
                      preferred_element_type=jnp.float32) + bl_ref[...]
        out_ref[...] = out.astype(out_ref.dtype)


def _chip_budget():
    """(per-step VMEM footprint budget, vmem_limit_bytes, multi-TC?) per gen."""
    try:
        kind = jax.devices()[0].device_kind.lower()
    except Exception:
        kind = ""
    if "v7" in kind:                                  # 64 MiB VMEM, 2 TCs/chip
        return 40 << 20, 52 << 20, True
    if any(g in kind for g in ("v4", "v5", "v6")):    # 128 MiB VMEM
        multi_tc = ("v4" in kind) or ("v5p" in kind)  # megacore parts
        return 80 << 20, 100 << 20, multi_tc
    return 40 << 20, 52 << 20, True                   # unknown -> most constrained


def _footprint_bytes(bb, bk, S, F, d_k, isz, wsz):
    f = 0
    f += 2 * bb * S * F * isz                          # x slab (double-buffered)
    f += 2 * bb * S * F * isz                          # out slab (double-buffered)
    f += 2 * bb * bk * F * isz                         # xkv key tile (double-buffered)
    f += (F * d_k + d_k + F * 2 * d_k + 2 * d_k + d_k * F + F) * wsz  # weights (1 buf)
    f += bb * S * d_k * isz                            # q scratch
    f += bb * S * d_k * 4                              # ctx accumulator (f32)
    f += 3 * bb * S * bk * 4                           # scores / e / attn (f32)
    f += bb * bk * 2 * d_k * (4 + isz)                 # kv projection + cast k/v
    f += 2 * bb * S * d_k * 4                          # live q / ctx tile values
    return f


def _pick_blocks(B, S, Sk, F, d_k, isz, wsz, budget, prefer_split_batch):
    def divisors(n):
        return [d for d in range(n, 0, -1) if n % d == 0]

    # Batch-tile candidates must keep the flattened (bb*S) block sublane-legal.
    b_cands = [d for d in divisors(B) if d == B or (d * S) % 8 == 0]
    min_bb = b_cands[-1]

    # Key-tile: full Sk or a sublane-aligned divisor; largest that fits.
    k_cands = [d for d in divisors(Sk) if d == Sk or d % 8 == 0]
    block_k = k_cands[-1]
    for d in k_cands:
        if _footprint_bytes(min_bb, d, S, F, d_k, isz, wsz) <= budget:
            block_k = d
            break

    def fits(bb):
        return _footprint_bytes(bb, block_k, S, F, d_k, isz, wsz) <= budget

    # On multi-TensorCore parts keep >= 2 batch grid steps so the "parallel"
    # axis can shard across cores; on single-TC parts just maximize the slab.
    if prefer_split_batch and B >= 2:
        for d in b_cands:
            if B // d >= 2 and fits(d):
                return d, block_k
    for d in b_cands:
        if fits(d):
            return d, block_k
    return min_bb, block_k


def attention_forward(x, x_kv, params, *, block_b=None, block_k=None):
    """x: (B, S, F) query input; x_kv: (B, Sk, F) keys/values input (init_keys)."""
    B, S, F = x.shape
    Bk, Sk, Fk = x_kv.shape
    assert Bk == B and Fk == F
    d_k = params["wq"].shape[1]

    budget, vmem_limit, multi_tc = _chip_budget()
    isz = x.dtype.itemsize
    wsz = params["wq"].dtype.itemsize
    bb, bk = _pick_blocks(B, S, Sk, F, d_k, isz, wsz, budget, multi_tc)
    if block_b is not None:
        bb = block_b
    if block_k is not None:
        bk = block_k
    assert B % bb == 0 and Sk % bk == 0
    grid = (B // bb, Sk // bk)

    # Fuse the K and V projections: one (F, 2*d_k) weight, one (1, 2*d_k) bias.
    wkv = jnp.concatenate([params["wk"], params["wv"]], axis=1)
    bkv = jnp.concatenate([params["bk"], params["bv"]], axis=1)

    # Queries/output keep batch*seq flattened into the matmul M dimension
    # (contiguous 2-D slabs, no size-1 leading block dim).
    x2 = x.reshape(B * S, F)

    kernel = functools.partial(_attention_kernel, block_b=bb, s_q=S,
                               block_k=bk, d_k=d_k, feat=F)

    # Grid-invariant weights/biases: single-buffered (no wasted VMEM copy).
    const = lambda shape: pl.BlockSpec(shape, lambda i, kk: (0, 0),
                                       pipeline_mode=pl.Buffered(1))

    flops = (2 * B * S * F * d_k            # q projection
             + 2 * B * Sk * F * 2 * d_k     # fused k|v projection
             + 2 * 2 * B * S * Sk * d_k     # scores + ctx
             + 2 * B * S * d_k * F)         # output projection
    bytes_accessed = int(
        isz * (x2.size + x_kv.size + B * S * F)
        + wsz * (params["wq"].size + params["bq"].size + wkv.size + bkv.size
                 + params["wl"].size + params["bl"].size))

    out2 = pl.pallas_call(
        kernel,
        out_shape=jax.ShapeDtypeStruct((B * S, F), x.dtype),
        grid_spec=pltpu.PrefetchScalarGridSpec(
            num_scalar_prefetch=0,
            grid=grid,
            in_specs=[
                pl.BlockSpec((bb * S, F), lambda i, kk: (i, 0)),      # x slab
                pl.BlockSpec((bb, bk, F), lambda i, kk: (i, kk, 0)),  # xkv key tile
                const((F, d_k)), const((1, d_k)),                     # Wq, bq
                const((F, 2 * d_k)), const((1, 2 * d_k)),             # W[k|v], b[k|v]
                const((d_k, F)), const((1, F)),                       # Wl, bl
            ],
            out_specs=pl.BlockSpec((bb * S, F), lambda i, kk: (i, 0)),
            scratch_shapes=[
                pltpu.VMEM((bb, S, d_k), x.dtype),      # scaled q (compute dtype)
                pltpu.VMEM((bb, S, d_k), jnp.float32),  # ctx accumulator
            ]),
        compiler_params=pltpu.CompilerParams(
            dimension_semantics=("parallel", "arbitrary"),
            vmem_limit_bytes=vmem_limit),
        cost_estimate=pl.CostEstimate(
            flops=flops,
            transcendentals=B * S * Sk,
            bytes_accessed=bytes_accessed),
    )(x2, x_kv,
      params["wq"], params["bq"],
      wkv, bkv,
      params["wl"], params["bl"])

    return out2.reshape(B, S, F)


def _init_params(key, input_size, d_k):
    """Deterministic nn.Linear-style init; weights stored as (in, out)."""
    ks = jax.random.split(key, 8)

    def linear(kw, kb, fan_in, fan_out):
        bound = 1.0 / (fan_in ** 0.5)
        w = jax.random.uniform(kw, (fan_in, fan_out), jnp.float32, -bound, bound)
        b = jax.random.uniform(kb, (1, fan_out), jnp.float32, -bound, bound)
        return w, b

    wq, bq = linear(ks[0], ks[1], input_size, d_k)
    wk, bk = linear(ks[2], ks[3], input_size, d_k)
    wv, bv = linear(ks[4], ks[5], input_size, d_k)
    wl, bl = linear(ks[6], ks[7], d_k, input_size)
    return dict(wq=wq, bq=bq, wk=wk, bk=bk, wv=wv, bv=bv, wl=wl, bl=bl)


def _reference(x, x_kv, p, d_k):
    # Full-precision f32 reference (default TPU matmul precision is bf16-ish).
    with jax.default_matmul_precision("highest"):
        q = x @ p["wq"] + p["bq"]
        k = x_kv @ p["wk"] + p["bk"]
        v = x_kv @ p["wv"] + p["bv"]
        scores = jnp.einsum("bqd,bkd->bqk", q, k) / (d_k ** 0.5)
        attn = jax.nn.softmax(scores, axis=-2)
        ctx = jnp.einsum("bqk,bkd->bqd", attn, v)
        return ctx @ p["wl"] + p["bl"]


if __name__ == "__main__":
    B, S, F, D_K = 2, 8, 32, 16

    key = jax.random.PRNGKey(0)
    k_x, k_xkv, k_p = jax.random.split(key, 3)
    x = jax.random.normal(k_x, (B, S, F), jnp.float32)
    # init_keys(x_kv): separate deterministic tensor for keys/values.
    x_kv = jax.random.normal(k_xkv, (B, S, F), jnp.float32)

    params = _init_params(k_p, F, D_K)

    out = attention_forward(x, x_kv, params)
    out = jax.block_until_ready(out)

    ref = _reference(x, x_kv, params, D_K)
    assert out.shape == (B, S, F)
    assert jnp.allclose(out, ref, atol=1e-4, rtol=1e-4), "mismatch vs reference"

    print("KERNEL_OK")
</pallas_src>

<mosaic_0001>
module attributes {stable_mosaic.version = 11 : i64} {
  func.func @_attention_kernel(%arg0: i32, %arg1: i32, %arg2: memref<8x32xf32, #tpu.memory_space<vmem>>, %arg3: memref<1x8x32xf32, #tpu.memory_space<vmem>>, %arg4: memref<32x16xf32, #tpu.memory_space<vmem>>, %arg5: memref<1x16xf32, #tpu.memory_space<vmem>>, %arg6: memref<32x32xf32, #tpu.memory_space<vmem>>, %arg7: memref<1x32xf32, #tpu.memory_space<vmem>>, %arg8: memref<16x32xf32, #tpu.memory_space<vmem>>, %arg9: memref<1x32xf32, #tpu.memory_space<vmem>>, %arg10: memref<8x32xf32, #tpu.memory_space<vmem>>, %arg11: memref<1x8x16xf32, #tpu.memory_space<vmem>>, %arg12: memref<1x8x16xf32, #tpu.memory_space<vmem>>) attributes {dimension_semantics = [#tpu.dimension_semantics<parallel>, #tpu.dimension_semantics<arbitrary>], iteration_bounds = array<i64: 2, 1>, scalar_prefetch = 0 : i64, scratch_operands = 2 : i64, tpu.core_type = #tpu.core_type<tc>, window_params = [{transform_indices = @transform_0, window_bounds = array<i64: 8, 32>}, {transform_indices = @transform_1, window_bounds = array<i64: 1, 8, 32>}, {pipeline_mode = #tpu.pipeline_mode<synchronous>, transform_indices = @transform_2, window_bounds = array<i64: 32, 16>}, {pipeline_mode = #tpu.pipeline_mode<synchronous>, transform_indices = @transform_3, window_bounds = array<i64: 1, 16>}, {pipeline_mode = #tpu.pipeline_mode<synchronous>, transform_indices = @transform_4, window_bounds = array<i64: 32, 32>}, {pipeline_mode = #tpu.pipeline_mode<synchronous>, transform_indices = @transform_5, window_bounds = array<i64: 1, 32>}, {pipeline_mode = #tpu.pipeline_mode<synchronous>, transform_indices = @transform_6, window_bounds = array<i64: 16, 32>}, {pipeline_mode = #tpu.pipeline_mode<synchronous>, transform_indices = @transform_7, window_bounds = array<i64: 1, 32>}, {transform_indices = @transform_8, window_bounds = array<i64: 8, 32>}]} {
    %c0_i32 = arith.constant 0 : i32
    %0 = arith.cmpi eq, %arg1, %c0_i32 : i32
    %1 = arith.extui %0 : i1 to i32
    %c0_i32_0 = arith.constant 0 : i32
    %2 = arith.cmpi ne, %1, %c0_i32_0 : i32
    scf.if %2 {
      %c0_23 = arith.constant 0 : index
      %c0_24 = arith.constant 0 : index
      %36 = vector.load %arg2[%c0_23, %c0_24] : memref<8x32xf32, #tpu.memory_space<vmem>>, vector<8x32xf32>
      %c0_25 = arith.constant 0 : index
      %c0_26 = arith.constant 0 : index
      %37 = vector.load %arg4[%c0_25, %c0_26] : memref<32x16xf32, #tpu.memory_space<vmem>>, vector<32x16xf32>
      %cst_27 = arith.constant dense<0.000000e+00> : vector<8x16xf32>
      %38 = tpu.matmul %36, %37, %cst_27 {dimension_numbers = #tpu.dot_dimension_numbers<[1], [0], [0], [1], [0, 0, 1, 1], [], []>} : vector<8x32xf32>, vector<32x16xf32>, vector<8x16xf32> -> vector<8x16xf32>
      %c0_28 = arith.constant 0 : index
      %c0_29 = arith.constant 0 : index
      %39 = vector.load %arg5[%c0_28, %c0_29] : memref<1x16xf32, #tpu.memory_space<vmem>>, vector<1x16xf32>
      %40 = vector.broadcast %39 : vector<1x16xf32> to vector<8x16xf32>
      %41 = arith.addf %38, %40 : vector<8x16xf32>
      %cst_30 = arith.constant 2.500000e-01 : f32
      %42 = vector.broadcast %cst_30 : f32 to vector<8x16xf32>
      %43 = arith.mulf %41, %42 : vector<8x16xf32>
      %44 = vector.shape_cast %43 : vector<8x16xf32> to vector<1x8x16xf32>
      %c0_31 = arith.constant 0 : index
      %c0_32 = arith.constant 0 : index
      %c0_33 = arith.constant 0 : index
      %45 = vector.load %arg11[%c0_31, %c0_32, %c0_33] : memref<1x8x16xf32, #tpu.memory_space<vmem>>, vector<1x8x16xf32>
      tpu.vector_store %arg11[%c0_31, %c0_32, %c0_33], %44 {strides = array<i32>} : memref<1x8x16xf32, #tpu.memory_space<vmem>>, vector<1x8x16xf32>,
      %cst_34 = arith.constant 0.000000e+00 : f32
      %46 = vector.broadcast %cst_34 : f32 to vector<1x8x16xf32>
      %c0_35 = arith.constant 0 : index
      %c0_36 = arith.constant 0 : index
      %c0_37 = arith.constant 0 : index
      %47 = vector.load %arg12[%c0_35, %c0_36, %c0_37] : memref<1x8x16xf32, #tpu.memory_space<vmem>>, vector<1x8x16xf32>
      tpu.vector_store %arg12[%c0_35, %c0_36, %c0_37], %46 {strides = array<i32>} : memref<1x8x16xf32, #tpu.memory_space<vmem>>, vector<1x8x16xf32>,
    } else {
    }
    %c0 = arith.constant 0 : index
    %c0_1 = arith.constant 0 : index
    %c0_2 = arith.constant 0 : index
    %3 = vector.load %arg3[%c0, %c0_1, %c0_2] : memref<1x8x32xf32, #tpu.memory_space<vmem>>, vector<1x8x32xf32>
    %4 = vector.shape_cast %3 : vector<1x8x32xf32> to vector<8x32xf32>
    %c0_3 = arith.constant 0 : index
    %c0_4 = arith.constant 0 : index
    %5 = vector.load %arg6[%c0_3, %c0_4] : memref<32x32xf32, #tpu.memory_space<vmem>>, vector<32x32xf32>
    %cst = arith.constant dense<0.000000e+00> : vector<8x32xf32>
    %6 = tpu.matmul %4, %5, %cst {dimension_numbers = #tpu.dot_dimension_numbers<[1], [0], [0], [1], [0, 0, 1, 1], [], []>} : vector<8x32xf32>, vector<32x32xf32>, vector<8x32xf32> -> vector<8x32xf32>
    %c0_5 = arith.constant 0 : index
    %c0_6 = arith.constant 0 : index
    %7 = vector.load %arg7[%c0_5, %c0_6] : memref<1x32xf32, #tpu.memory_space<vmem>>, vector<1x32xf32>
    %8 = vector.broadcast %7 : vector<1x32xf32> to vector<8x32xf32>
    %9 = arith.addf %6, %8 : vector<8x32xf32>
    %10 = vector.shape_cast %9 : vector<8x32xf32> to vector<1x8x32xf32>
    %11 = vector.extract_strided_slice %10 {offsets = [0, 0, 0], sizes = [1, 8, 16], strides = [1, 1, 1]} : vector<1x8x32xf32> to vector<1x8x16xf32>
    %12 = vector.extract_strided_slice %10 {offsets = [0, 0, 16], sizes = [1, 8, 16], strides = [1, 1, 1]} : vector<1x8x32xf32> to vector<1x8x16xf32>
    %c0_7 = arith.constant 0 : index
    %c0_8 = arith.constant 0 : index
    %c0_9 = arith.constant 0 : index
    %13 = vector.load %arg11[%c0_7, %c0_8, %c0_9] : memref<1x8x16xf32, #tpu.memory_space<vmem>>, vector<1x8x16xf32>
    "tpu.trace_start"() <{level = 10 : i32, message = "bqd,bkd->bqk"}> : () -> ()
    %cst_10 = arith.constant dense<0.000000e+00> : vector<1x8x8xf32>
    %14 = tpu.matmul %13, %11, %cst_10 {dimension_numbers = #tpu.dot_dimension_numbers<[2], [2], [1], [1], [0, 0, 0, 1, 1, 1], [0], [0]>} : vector<1x8x16xf32>, vector<1x8x16xf32>, vector<1x8x8xf32> -> vector<1x8x8xf32>
    "tpu.trace_stop"() : () -> ()
    %cst_11 = arith.constant dense<0xFF800000> : vector<1x8xf32>
    %15 = vector.multi_reduction <maximumf>, %14, %cst_11 [1] : vector<1x8x8xf32> to vector<1x8xf32>
    %16 = vector.shape_cast %15 : vector<1x8xf32> to vector<1x1x8xf32>
    %17 = vector.broadcast %16 : vector<1x1x8xf32> to vector<1x8x8xf32>
    %18 = arith.subf %14, %17 : vector<1x8x8xf32>
    %19 = math.exp %18 : vector<1x8x8xf32>
    %cst_12 = arith.constant dense<0.000000e+00> : vector<1x8xf32>
    %20 = vector.multi_reduction <add>, %19, %cst_12 [1] : vector<1x8x8xf32> to vector<1x8xf32>
    %21 = vector.shape_cast %20 : vector<1x8xf32> to vector<1x1x8xf32>
    %22 = tpu.reciprocal %21 {approx = true} : vector<1x1x8xf32> -> vector<1x1x8xf32>
    %23 = arith.mulf %21, %22 : vector<1x1x8xf32>
    %cst_13 = arith.constant 2.000000e+00 : f32
    %24 = vector.broadcast %cst_13 : f32 to vector<1x1x8xf32>
    %25 = arith.subf %24, %23 : vector<1x1x8xf32>
    %26 = arith.mulf %22, %25 : vector<1x1x8xf32>
    %27 = vector.broadcast %26 : vector<1x1x8xf32> to vector<1x8x8xf32>
    %28 = arith.mulf %19, %27 : vector<1x8x8xf32>
    %c0_14 = arith.constant 0 : index
    %c0_15 = arith.constant 0 : index
    %c0_16 = arith.constant 0 : index
    %29 = vector.load %arg12[%c0_14, %c0_15, %c0_16] : memref<1x8x16xf32, #tpu.memory_space<vmem>>, vector<1x8x16xf32>
    "tpu.trace_start"() <{level = 10 : i32, message = "bqk,bkd->bqd"}> : () -> ()
    %cst_17 = arith.constant dense<0.000000e+00> : vector<1x8x16xf32>
    %30 = tpu.matmul %28, %12, %cst_17 {dimension_numbers = #tpu.dot_dimension_numbers<[2], [1], [1], [2], [0, 0, 0, 1, 1, 2], [0], [0]>} : vector<1x8x8xf32>, vector<1x8x16xf32>, vector<1x8x16xf32> -> vector<1x8x16xf32>
    "tpu.trace_stop"() : () -> ()
    %31 = arith.addf %29, %30 : vector<1x8x16xf32>
    %c0_18 = arith.constant 0 : index
    %c0_19 = arith.constant 0 : index
    %c0_20 = arith.constant 0 : index
    %32 = vector.load %arg12[%c0_18, %c0_19, %c0_20] : memref<1x8x16xf32, #tpu.memory_space<vmem>>, vector<1x8x16xf32>
    tpu.vector_store %arg12[%c0_18, %c0_19, %c0_20], %31 {strides = array<i32>} : memref<1x8x16xf32, #tpu.memory_space<vmem>>, vector<1x8x16xf32>,
    %c0_i32_21 = arith.constant 0 : i32
    %33 = arith.cmpi eq, %arg1, %c0_i32_21 : i32
    %34 = arith.extui %33 : i1 to i32
    %c0_i32_22 = arith.constant 0 : i32
    %35 = arith.cmpi ne, %34, %c0_i32_22 : i32
    scf.if %35 {
      %c0_23 = arith.constant 0 : index
      %c0_24 = arith.constant 0 : index
      %c0_25 = arith.constant 0 : index
      %36 = vector.load %arg12[%c0_23, %c0_24, %c0_25] : memref<1x8x16xf32, #tpu.memory_space<vmem>>, vector<1x8x16xf32>
      %37 = vector.shape_cast %36 : vector<1x8x16xf32> to vector<8x16xf32>
      %c0_26 = arith.constant 0 : index
      %c0_27 = arith.constant 0 : index
      %38 = vector.load %arg8[%c0_26, %c0_27] : memref<16x32xf32, #tpu.memory_space<vmem>>, vector<16x32xf32>
      %cst_28 = arith.constant dense<0.000000e+00> : vector<8x32xf32>
      %39 = tpu.matmul %37, %38, %cst_28 {dimension_numbers = #tpu.dot_dimension_numbers<[1], [0], [0], [1], [0, 0, 1, 1], [], []>} : vector<8x16xf32>, vector<16x32xf32>, vector<8x32xf32> -> vector<8x32xf32>
      %c0_29 = arith.constant 0 : index
      %c0_30 = arith.constant 0 : index
      %40 = vector.load %arg9[%c0_29, %c0_30] : memref<1x32xf32, #tpu.memory_space<vmem>>, vector<1x32xf32>
      %41 = vector.broadcast %40 : vector<1x32xf32> to vector<8x32xf32>
      %42 = arith.addf %39, %41 : vector<8x32xf32>
      %c0_31 = arith.constant 0 : index
      %c0_32 = arith.constant 0 : index
      %43 = vector.load %arg10[%c0_31, %c0_32] : memref<8x32xf32, #tpu.memory_space<vmem>>, vector<8x32xf32>
      tpu.vector_store %arg10[%c0_31, %c0_32], %42 {strides = array<i32>} : memref<8x32xf32, #tpu.memory_space<vmem>>, vector<8x32xf32>,
    } else {
    }
    return
  }
  func.func @transform_0(%arg0: i32, %arg1: i32) -> (i32, i32) {
    %c0_i32 = arith.constant 0 : i32
    %c0_i32_0 = arith.constant 0 : i32
    return %arg0, %c0_i32 : i32, i32
  }
  func.func @transform_1(%arg0: i32, %arg1: i32) -> (i32, i32, i32) {
    %c0_i32 = arith.constant 0 : i32
    %c0_i32_0 = arith.constant 0 : i32
    return %arg0, %arg1, %c0_i32 : i32, i32, i32
  }
  func.func @transform_2(%arg0: i32, %arg1: i32) -> (i32, i32) {
    %c0_i32 = arith.constant 0 : i32
    %c0_i32_0 = arith.constant 0 : i32
    %c0_i32_1 = arith.constant 0 : i32
    return %c0_i32, %c0_i32_0 : i32, i32
  }
  func.func @transform_3(%arg0: i32, %arg1: i32) -> (i32, i32) {
    %c0_i32 = arith.constant 0 : i32
    %c0_i32_0 = arith.constant 0 : i32
    %c0_i32_1 = arith.constant 0 : i32
    return %c0_i32, %c0_i32_0 : i32, i32
  }
  func.func @transform_4(%arg0: i32, %arg1: i32) -> (i32, i32) {
    %c0_i32 = arith.constant 0 : i32
    %c0_i32_0 = arith.constant 0 : i32
    %c0_i32_1 = arith.constant 0 : i32
    return %c0_i32, %c0_i32_0 : i32, i32
  }
  func.func @transform_5(%arg0: i32, %arg1: i32) -> (i32, i32) {
    %c0_i32 = arith.constant 0 : i32
    %c0_i32_0 = arith.constant 0 : i32
    %c0_i32_1 = arith.constant 0 : i32
    return %c0_i32, %c0_i32_0 : i32, i32
  }
  func.func @transform_6(%arg0: i32, %arg1: i32) -> (i32, i32) {
    %c0_i32 = arith.constant 0 : i32
    %c0_i32_0 = arith.constant 0 : i32
    %c0_i32_1 = arith.constant 0 : i32
    return %c0_i32, %c0_i32_0 : i32, i32
  }
  func.func @transform_7(%arg0: i32, %arg1: i32) -> (i32, i32) {
    %c0_i32 = arith.constant 0 : i32
    %c0_i32_0 = arith.constant 0 : i32
    %c0_i32_1 = arith.constant 0 : i32
    return %c0_i32, %c0_i32_0 : i32, i32
  }
  func.func @transform_8(%arg0: i32, %arg1: i32) -> (i32, i32) {
    %c0_i32 = arith.constant 0 : i32
    %c0_i32_0 = arith.constant 0 : i32
    return %arg0, %c0_i32 : i32, i32
  }
}

</mosaic_0001>

<bundles_post_ra>
// kernel: tpu_custom_call.1
= control target key start
LH: loop header
LB: loop body
LE: loop exit
PB: predicated region body
PF: predicated region fallthrough
CT: control target
= control target key end

     0   :  { %s1539_s0 = inlined_call_operand.vmem [shape: f32[16,32], index: 0, kind: input, shape index: {}]   ;;  %s1540_s1 = inlined_call_operand.hbm [shape: f32[2,8,32], index: 1, kind: input, shape index: {}]   ;;  %s1541_s2 = inlined_call_operand.vmem [shape: f32[32,16], index: 2, kind: input, shape index: {}]   ;;  %s1542_s3 = inlined_call_operand.vmem [shape: f32[1,16], index: 3, kind: input, shape index: {}]   ;;  %s1543_s4 = inlined_call_operand.vmem [shape: f32[32,32], index: 4, kind: input, shape index: {}]   ;;  %s1544_s5 = inlined_call_operand.vmem [shape: f32[1,32], index: 5, kind: input, shape index: {}]   ;;  %s1545_s6 = inlined_call_operand.hbm [shape: f32[16,32], index: 6, kind: input, shape index: {}]   ;;  %s1546_s7 = inlined_call_operand.vmem [shape: f32[1,32], index: 7, kind: input, shape index: {}]   ;;  %s1547_s8 = inlined_call_operand.hbm [shape: f32[16,32], index: 8, kind: output, shape index: {}]  }
   0x1   :  { %1553 = sst [smem:[#allocation17_spill]] %s1545_s6 }
   0x2   :  { %13 = vsyncpa [#allocation5], 0 }
   0x3   :  { %15 = vsyncpa [#allocation5 + $0x1], 0 }
   0x4   :  { %16 = vsyncpa [#allocation8], 0 }
   0x5   :  { %17 = vsyncpa [#allocation6], 0 }
   0x6   :  { %19 = vsyncpa [#allocation6 + $0x1], 0  ;;  %s1286_s27 = smov 0   ;;  %s1288_s28 = smov 0  }
   0x7   :  { %s1290_s29 = smov 0   ;;  %s1292_s30 = smov 0  }
   0x8   :  { %s1294_s9 = smov 0   ;;  %s1296_s10 = smov 0  }
   0x9 LB: > { %1554 = sst [smem:[#allocation13_spill]] %s1211_s27  ;;  %s930_s11 = sadd.s32 4294967295, %s1231_s10   ;;  %s1231_s10 = sphi %s1296_s10, %s25_s10   ;;  %s1227_s9 = sphi %s1294_s9, %s1574_s9   ;;  %s1223_s30 = sphi %s1292_s30, %s1573_s30   ;;  %s1219_s29 = sphi %s1290_s29, %s1577_s29   ;;  %s1215_s28 = sphi %s1288_s28, %s1576_s28   ;;  %s1211_s27 = sphi %s1286_s27, %s1575_s27  }
   0xa   : > { %1555 = sst [smem:[#allocation14_spill]] %s1227_s9  ;;  %s931_s12 = sadd.s32 4294967294, %s1231_s10  }
   0xb   : > { %p85_p0 = scmp.ne.s32.totalorder %s1215_s28, %s1211_s27  ;;  %p1320_p1 = scmp.eq.s32.totalorder %s930_s11, 0 }
   0xc   : > { %p1324_p2 = scmp.eq.s32.totalorder %s930_s11, 1  ;;  %p241_p3 = scmp.eq.s32.totalorder %s931_s12, 1 }
   0xd   : > { %p1330_p4 = por %p1320_p1, %p85_p0  ;;  %p932_p5 = scmp.ge.s32.totalorder %s1231_s10, 1 }
   0xe   : > { %p1335_p6 = por %p241_p3, %p85_p0  ;;  %p248_p7 = scmp.lt.s32.totalorder %s1231_s10, 3 }
   0xf   : > { %s1558_s15 = scalar_select %p1330_p4, 1, 0 }
  0x10   : > { %s1559_s16 = scalar_select %p1335_p6, 1, 0 }
  0x11   : > { %p1340_p8 = pnand %p932_p5, %p248_p7  ;;  %s1233_s18 = smov [#allocation7]  }
  0x12   : > { %1560 = sst [smem:[#allocation15_spill]] %s1559_s16  ;;  %s272_s19 = sshll.u32 %s1233_s18, 4  ;;  %s273_s19 = int_to_ptr.vmem [resolvable:$true] %s272_s19 }
  0x13   : > { %p1019_p9 = pneg %p1340_p8  ;;  %s37_s21 = sadd.s32 1, %s1227_s9 }
  0x14   : > { %s1104_s22 = scalar_lea.vmem %s273_s19, 256  ;;  %p1112_p5 = scmp.lt.s32.totalorder %s273_s19, %s273_s19 }
  0x15   : > { %p1349_p11 = pnand %p1019_p9, %p1320_p1  ;;  %p1105_p13 = scmp.ne.s32.totalorder %s273_s19, %s1104_s22 }
  0x16   : > { %p1113_p7 = scmp.lt.s32.totalorder %s1104_s22, %s1104_s22 }
  0x17   : > { %p1095_p12 = pneg %p1349_p11 }
  0x18   : > { %p1114_p6 = por %p1113_p7, %p1112_p5 }
  0x19   : > { %p1107_p0 = pnand %p1105_p13, %p1095_p12 }
  0x1b   : > { %p1108_p3 = pneg %p1107_p0 }
  0x1d   : > { %p1115_p4 = pnand %p1114_p6, %p1108_p3 }
  0x1f   : > { %1118 = shalt.err (!%p1115_p4)
}
  0x20   : > { %s1234_s23 = smov 128   ;;  %s1235_s24 = smov 8  }
  0x21   : > { %s1563_s6 = sld [smem:[#allocation17_spill]]  ;;  %p39_p6 = scmp.ge.s32.totalorder %s37_s21, 2 }
  0x22   : > { %s72_s11 = sadd.s32 1, %s1219_s29  ;;  %p79_p4 = scmp.ne.s32.totalorder %s1219_s29, %s1215_s28 }
  0x23   : > { %p80_p9 = scmp.eq.s32.totalorder %s1231_s10, 0  ;;  %s1579_s21 = smov (%p39_p6, %s37_s21), 0 }
  0x24   : > { %1564 = sst [smem:[#allocation16_spill]] %s1579_s21  ;;  %p1373_p13 = por %p1324_p2, %p79_p4 }
  0x25   : > { %p1367_p12 = por %p80_p9, %p79_p4  ;;  %s67_s20 = ssub.s32 %s1227_s9, %s1579_s21 }
  0x26   : > { %p1032_p0 = scmp.lt.s32.totalorder %s1231_s10, 2 }
  0x27   : > { %1022 = dma.hbm_to_vmem [thread:$0]  (!%p1349_p11), %s1563_s6, 256, %s273_s19, [#allocation8], %s1234_s23, %s1234_s23, %s1235_s24  }
  0x28   : > { %p70_p11 = scmp.eq.s32.totalorder %s67_s20, 0  ;;  %s296_s19 = sand.u32 1, %s1219_s29  }
  0x29   : > { %s935_s22 = sshll.u32 %s296_s19, 3  ;;  %s936_s24 = sshll.u32 %s1227_s9, 7 }
  0x2a   : > { %s1382_s23 = scalar_select %p70_p11, %s1219_s29, %s72_s11  }
  0x2b   : > { %s306_s6 = scalar_lea.hbm %s1540_s1, %s936_s24  ;;  %s300_s16 = scalar_lea.vmem [#allocation4], %s935_s22 }
  0x2c   : > { %s308_s27 = sshll.u32 %s300_s16, 4  ;;  %p1390_p2 = pnand %p1032_p0, %p1367_p12  ;;  %s309_s27 = int_to_ptr.vmem [resolvable:$true] %s308_s27 }
  0x2d   : > { %s297_s21 = scalar_lea.sflag [#allocation5], %s296_s19  ;;  %s1132_s20 = scalar_lea.vmem %s309_s27, 128 }
  0x2e   : > { %p1121_p3 = pneg %p1390_p2  ;;  %p1133_p5 = scmp.ne.s32.totalorder %s309_s27, %s1132_s20 }
  0x2f   : > { %s1236_s11 = smov [#allocation4]  }
  0x30   : > { %p1135_p7 = pnand %p1133_p5, %p1121_p3  ;;  %s1137_s9 = sshll.u32 %s1236_s11, 4  ;;  %s1138_s9 = int_to_ptr.vmem [resolvable:$false] %s1137_s9 }
  0x31   : > { %s1139_s24 = scalar_lea.vmem %s1138_s9, 256  ;;  %p1140_p4 = scmp.lt.s32.totalorder %s309_s27, %s1138_s9 }
  0x32   : > { %p1136_p6 = pneg %p1135_p7  ;;  %p1141_p9 = scmp.lt.s32.totalorder %s1139_s24, %s1132_s20 }
  0x34   : > { %p1142_p11 = por %p1141_p9, %p1140_p4 }
  0x36   : > { %p1143_p10 = pnand %p1142_p11, %p1136_p6 }
  0x38   : > { %1146 = shalt.err (!%p1143_p10)
}
  0x39   : > { %1026 = dma.hbm_to_vmem [thread:$0]  (!%p1390_p2), %s306_s6, 128, %s309_s27, %s297_s21  }
  0x3a   : > { %317 = sbr.rel (%p1340_p8) target bundleno = 951 (0x3b7), region = 52  ;;  %s1401_s16 = sand.u32 (!%p1340_p8), 1, %s1215_s28  }
  0x3b   : > { %s938_s12 = sshll.u32 (!%p1340_p8), %s1401_s16, 3  ;;  %s320_s19 = scalar_lea.sflag (!%p1340_p8), [#allocation5], %s1401_s16 }
  0x3c   : > { %s1407_s9 = scalar_lea.vmem (!%p1340_p8), [#allocation4], %s938_s12  ;;  %p1568_p12 = scmp.ne.s32.totalorder (!%p1340_p8), %s1558_s15, 0 }
  0x3f   : > { %1198 = dma.done.wait (%p1568_p12), %s320_s19, 128  }
  0x40   : > { %1200 = vsyncadd (%p1568_p12), %s320_s19, 4294967168 }
  0x41   : > { %1202 = dma.done.wait (%p1320_p1), [#allocation8], 256  }
  0x42   : > { %1204 = vsyncadd (%p1320_p1), [#allocation8], 4294967040  ;;  %p364_p8 = scmp.lt.s32.totalorder %s1223_s30, 1  ;;  %v1237_v0 = vmov 0.0   ;;  %vm1238_vm0 = vmmov 0   ;;  %v376_v1 = vld [vmem:[%s1541_s2 + $0x18] sm:$0xff] }
  0x43   : > { %972 = vmatprep.subr.mxu0 %v1237_v0  ;;  %983 = vmatprep.subr.mxu1 %v1237_v0  ;;  %v375_v2 = vld [vmem:[%s1541_s2 + $0x10] sm:$0xff]  ;;  %v466_v3 = vld [vmem:[%s1543_s4 + $0x18] sm:$0xff]  ;;  %v374_v5 = vld [vmem:[%s1541_s2 + $0x8] sm:$0xff]  ;;  %vm384_vm1 = vcmask 261120   ;;  %vm459_vm2 = vcmask 130048   ;;  %s1239_s20 = smov 112  }
  0x44   : > { %980 = vmatprep.mubr.msk.f32.mxu0 %vm1238_vm0, %v1237_v0  ;;  %s365_s6 = scalar_select %p364_p8, %s1223_s30, 1  ;;  %991 = vmatprep.mubr.msk.f32.mxu1 %vm1238_vm0, %v1237_v0  ;;  %v465_v4 = vld [vmem:[%s1543_s4 + $0x10] sm:$0xff]  ;;  %v464_v6 = vld [vmem:[%s1543_s4 + $0x8] sm:$0xff]  ;;  %v373_v7 = vld [vmem:[%s1541_s2] sm:$0xff]  ;;  %461 = vst.msk [vmem:[#allocation3] sm:$0xff] %vm459_vm2, %v1237_v0  ;;  %vm626_vm3 = vcmask 64512  }
  0x45   : > { %973 = vmatpush3.msra.mxu0 %v376_v1  ;;  %984 = vmatpush3.msra.mxu1 %v466_v3  ;;  %v463_v9 = vld [vmem:[%s1543_s4] sm:$0xff]  ;;  %v462_v10 = vld [vmem:[%s1407_s9] sm:$0xff]  ;;  %v733_v46 = vld [vmem:[#allocation7 + $0x8] sm:$0xff]  ;;  %s952_s19 = sshll.u32 %s1223_s30, 7  ;;  %s1240_s30 = smov [#allocation9]  }
  0x46   : > { %s941_s27 = sshll.u32 %s365_s6, 3  ;;  %974 = vmatprep.subr.mxu0 %v1237_v0  ;;  %985 = vmatprep.subr.mxu1 %v1237_v0  ;;  %v942_v11 = vld [vmem:[%s1542_s3] ss:$0 sm:$0xff]  ;;  %s1496_s21 = scalar_lea.hbm %s1547_s8, %s952_s19 }
  0x47   : > { %s367_s6 = scalar_lea.vmem %s1539_s0, %s941_s27  ;;  %975 = vmatpush3.msra.mxu0 %v375_v2  ;;  %986 = vmatpush3.msra.mxu1 %v465_v4  ;;  %v944_v12 = vld [vmem:[%s1544_s5] ss:$0 sm:$0xff]  ;;  %s816_s27 = scalar_lea.sflag [#allocation6], %s1401_s16 }
  0x48   : > { %976 = vmatprep.subr.mxu0 %v1237_v0  ;;  %v372_v8 = vld [vmem:[%s367_s6] sm:$0xff]  ;;  %987 = vmatprep.subr.mxu1 %v1237_v0  ;;  %s363_s6 = scalar_lea.vmem [#allocation9], %s938_s12  ;;  %s1151_s12 = sshll.u32 %s1240_s30, 4  ;;  %s1152_s12 = int_to_ptr.vmem [resolvable:$false] %s1151_s12 }
  0x49   : > { %977 = vmatpush3.msra.mxu0 %v374_v5  ;;  %988 = vmatpush3.msra.mxu1 %v464_v6  ;;  %v732_v47 = vld [vmem:[#allocation7] sm:$0xff]  ;;  %s829_s15 = sshll.u32 %s363_s6, 4  ;;  %s1153_s9 = scalar_lea.vmem %s1152_s12, 256  ;;  %s830_s15 = int_to_ptr.vmem [resolvable:$true] %s829_s15 }
  0x4a   : > { %978 = vmatprep.subr.mxu0 %v1237_v0  ;;  %989 = vmatprep.subr.mxu1 %v1237_v0  ;;  %v949_v53 = vld [vmem:[%s1546_s7] ss:$0 sm:$0xff]  ;;  %s1147_s22 = scalar_lea.vmem %s830_s15, 128  ;;  %p1154_p2 = scmp.lt.s32.totalorder %s830_s15, %s1152_s12 }
  0x4b   : > { %979 = vmatpush3.msra.mxu0 %v373_v7  ;;  %990 = vmatpush3.msra.mxu1 %v463_v9  ;;  %v649_v48 = vld [vmem:[#allocation3] sm:$0xff]  ;;  %p1148_p1 = scmp.ne.s32.totalorder %s830_s15, %s1147_s22  ;;  %p1155_p3 = scmp.lt.s32.totalorder %s1153_s9, %s1147_s22 }
  0x4c   : > { %981 = vmatmul.mubr.msk.f32.vlgmr.msra.gmra.mxu0 %vm384_vm1, %v372_v8  ;;  %992 = vmatmul.mubr.msk.f32.vlgmr.msra.gmra.mxu1 %vm384_vm1, %v462_v10 }
  0x4d   : > { %994 = vmatprep.subr.mxu0 %v1237_v0  ;;  %996 = vmatprep.mubr.msk.f32.mxu0 %vm1238_vm0, %v1237_v0  ;;  %p1149_p10 = pnand %p1148_p1, %p1373_p13  ;;  %p1156_p5 = por %p1155_p3, %p1154_p2 }
  0x4e   : > { %999 = vmatprep.subr.mxu1 %v1237_v0  ;;  %1001 = vmatprep.mubr.msk.f32.mxu1 %vm1238_vm0, %v1237_v0 }
  0x4f   : > { %p1150_p0 = pneg %p1149_p10 }
  0x51   : > { %p1157_p7 = pnand %p1156_p5, %p1150_p0 }
 0x10c   : > { %v454_v13 = vpop.f32.mrf.mxu0  ;;  %v544_v15 = vpop.f32.mrf.mxu1 }
 0x10d   : > { %v455_v14 = vadd.f32 %v942_v11, %v454_v13  ;;  %v545_v17 = vadd.f32 %v944_v12, %v544_v15 }
 0x10e   : > { %v982_v16 = vpop.f32.mrf.mxu0  ;;  %v993_v19 = vpop.f32.mrf.mxu1 }
 0x10f   : > { %v458_v18 = vmul.f32 0.25, %v455_v14  ;;  %995 = vmatpush3.xpose.msk.msra.mxu0 %vm459_vm2, %v545_v17  ;;  %650 = vrot.lane.b32.xlu0 %v545_v17, %s1239_s20 }
 0x110   : > { %1004 = vmatprep.subr.mxu0 %v1237_v0 }
 0x111   : > { %460 = vst.msk [vmem:[#allocation2] sm:$0xff] %vm459_vm2, %v458_v18 }
 0x118   : > { %v548_v20 = vld [vmem:[#allocation2] sm:$0xff] }
 0x119   : > { %997 = vmatmul.mubr.msk.f32.vlgmr.msra.gmra.mxu0 %vm459_vm2, %v548_v20 }
 0x11a   : > { %1008 = vmatprep.mubr.msk.f32.mxu0 %vm1238_vm0, %v1237_v0  ;;  %1005 = vmatpush3.msra.mxu0 %v733_v46 }
 0x11b   : > { %1006 = vmatprep.subr.mxu0 %v1237_v0 }
 0x11c   : > { %1007 = vmatpush3.msra.mxu0 %v732_v47 }
 0x181   : > { %v651_v21 = vpop.permute.xlu0 %650 }
 0x182   : > { %1000 = vmatpush3.msra.mxu1 %v651_v21 }
 0x1d9   : > { %v622_v22 = vpop.f32.mrf.mxu0 }
 0x1da   : > { %v627_v23 = vsel %vm626_vm3, %v622_v22, -inf }
 0x1db   : > { %v628_v24 = vrot.slane %v627_v23, 4  ;;  %v998_v25 = vpop.f32.mrf.mxu0 }
 0x1dd   : > { %v629_v26 = vmax.f32 %v627_v23, %v628_v24 }
 0x1df   : > { %v630_v27 = vrot.slane %v629_v26, 2 }
 0x1e1   : > { %v631_v28 = vmax.f32 %v629_v26, %v630_v27 }
 0x1e3   : > { %v632_v29 = vrot.slane %v631_v28, 1 }
 0x1e5   : > { %v633_v30 = vmax.f32 %v631_v28, %v632_v29 }
 0x1e7   : > { %v634_v31 = vsub.f32 %v622_v22, %v633_v30 }
 0x1e9   : > { %v635_v32 = vmul.f32 1.442695, %v634_v31 }
 0x1eb   : > { %1089 = vpow2.f32 %v635_v32 }
 0x1f8   : > { %v1090_v33 = vpop.eup %1089 }
 0x1f9   : > { %v637_v34 = vsel %vm626_vm3, %v1090_v33, 0.0 }
 0x1fa   : > { %v638_v35 = vrot.slane %v637_v34, 4 }
 0x1fc   : > { %v639_v36 = vadd.f32 %v638_v35, %v637_v34 }
 0x1fe   : > { %v640_v37 = vrot.slane %v639_v36, 2 }
 0x200   : > { %v641_v38 = vadd.f32 %v640_v37, %v639_v36 }
 0x202   : > { %v642_v39 = vrot.slane %v641_v38, 1 }
 0x204   : > { %v643_v40 = vadd.f32 %v642_v39, %v641_v38 }
 0x206   : > { %1091 = vrcp.f32 %v643_v40 }
 0x213   : > { %v1092_v41 = vpop.eup %1091 }
 0x214   : > { %v645_v42 = vmul.f32 %v1092_v41, %v643_v40 }
 0x216   : > { %v646_v43 = vsub.f32 2.0, %v645_v42 }
 0x218   : > { %v647_v44 = vmul.f32 %v1092_v41, %v646_v43 }
 0x21a   : > { %v648_v45 = vmul.f32 %v1090_v33, %v647_v44 }
 0x21c   : > { %1002 = vmatmul.mubr.msk.f32.vlgmr.msra.gmra.mxu1 %vm626_vm3, %v648_v45 }
 0x2dc   : > { %v722_v49 = vpop.f32.mrf.mxu1 }
 0x2dd   : > { %v726_v50 = vadd.f32 %v722_v49, %v649_v48 }
 0x2de   : > { %v1003_v51 = vpop.f32.mrf.mxu1 }
 0x2df   : > { %727 = vst.msk [vmem:[#allocation3] sm:$0xff] %vm459_vm2, %v726_v50 }
 0x2e6   : > { %v731_v52 = vld [vmem:[#allocation3] sm:$0xff] }
 0x2e7   : > { %1009 = vmatmul.mubr.msk.f32.vlgmr.msra.gmra.mxu0 %vm459_vm2, %v731_v52 }
 0x3a7   : > { %v810_v54 = vpop.f32.mrf.mxu0 }
 0x3a8   : > { %v811_v55 = vadd.f32 %v949_v53, %v810_v54 }
 0x3a9   : > { %v1010_v56 = vpop.f32.mrf.mxu0 }
 0x3aa   : > { %814 = vst.msk [vmem:[%s363_s6] sm:$0xff] %vm384_vm1, %v811_v55 }
 0x3ab   : > { %1160 = shalt.err (!%p1157_p7)
}
 0x3ac   : > { %s1161_s25 = scalar_lea.hbm %s1496_s21, 128  ;;  %s1165_s14 = scalar_lea.hbm %s1547_s8, 256 }
 0x3ad   : > { %p1162_p6 = scmp.ne.s32.totalorder %s1496_s21, %s1161_s25  ;;  %p1166_p11 = scmp.lt.s32.totalorder %s1496_s21, %s1547_s8 }
 0x3ae   : > { %p1167_p12 = scmp.lt.s32.totalorder %s1165_s14, %s1161_s25 }
 0x3af   : > { %p1163_p4 = pnand %p1162_p6, %p1373_p13 }
 0x3b0   : > { %p1168_p8 = por %p1167_p12, %p1166_p11 }
 0x3b1   : > { %p1164_p9 = pneg %p1163_p4 }
 0x3b3   : > { %p1169_p1 = pnand %p1168_p8, %p1164_p9 }
 0x3b5   : > { %1172 = shalt.err (!%p1169_p1)
}
 0x3b6   : > { %1017 = dma.vmem_to_hbm [thread:$0]  (%p1373_p13), %s830_s15, 128, %s1496_s21, %s816_s27  }
 0x3b7 PF: > { %s1569_s24 = sld [smem:[#allocation13_spill]]  ;;  %p1572_p0 = scmp.ge.s32.totalorder %s1231_s10, 2 }
 0x3b8   : > { %s1570_s19 = sld [smem:[#allocation15_spill]] }
 0x3bd   : > { %s841_s6 = sand.u32 1, %s1569_s24  }
 0x3be   : > { %p1571_p10 = scmp.ne.s32.totalorder %s1570_s19, 0  ;;  %s842_s13 = scalar_lea.sflag [#allocation6], %s841_s6 }
 0x3c0   : > { %p1028_p2 = pnand %p1572_p0, %p1571_p10 }
 0x3c2   : > { %p1029_p3 = pneg %p1028_p2 }
 0x3c4   : > { %1206 = dma.done.wait (%p1029_p3), %s842_s13, 128  }
 0x3c5   : > { %1208 = vsyncadd (%p1029_p3), %s842_s13, 4294967168  ;;  %s25_s10 = sadd.s32 1, %s1231_s10   ;;  %s1573_s30 = sld [smem:[#allocation14_spill]] }
 0x3c6   : > { %p22_p5 = scmp.ge.s32.totalorder %s25_s10, 4   ;;  %s1574_s9 = sld [smem:[#allocation16_spill]] }
 0x3c7   : > { %s1575_s27 = smov %s1215_s28  ;;  %s1576_s28 = smov %s1219_s29 }
 0x3c8   : > { %s1577_s29 = smov %s1382_s23  ;;  %24 = sbr.rel (!%p22_p5) target bundleno = 9 (0x9), region = 112 }
 0x3cd   :  { %847 = vsyncpa [#allocation5], 1 }
 0x3ce   :  { %849 = vsyncpa [#allocation5 + $0x1], 1 }
 0x3cf   :  { %850 = vsyncpa [#allocation8], 1 }
 0x3d0   :  { %851 = vsyncpa [#allocation6], 1 }
 0x3d1   :  { %853 = vsyncpa [#allocation6 + $0x1], 1 }

</bundles_post_ra>
